<compile_context>
chip_gen: v5e
topology: v5e:2x2
jax: 0.10.0
libtpu: 0.0.40
codegen_flags: <defaults>
</compile_context>

<pallas_src>
import jax
import jax.numpy as jnp
from jax.experimental import pallas as pl
from jax.experimental.pallas import tpu as pltpu


def _round_up(x: int, m: int) -> int:
    return ((x + m - 1) // m) * m


def _cdiv(a: int, b: int) -> int:
    return (a + b - 1) // b


def _pick_vmem_limit() -> int:
    # v5e/v6e: 128 MiB physical VMEM -> allow a generous 96 MiB scoped budget.
    # v7x: only 64 MiB per TensorCore -> fall back to 48 MiB (safe everywhere).
    try:
        info = pltpu.get_tpu_info()
        cap = getattr(info, "vmem_capacity_bytes", None)
        if cap is not None and cap >= (100 << 20):
            return 96 << 20
    except Exception:
        pass
    return 48 << 20


def _mm_kernel(x_ref, y_ref, o_ref):
    # The output block index is constant along k (innermost, "arbitrary"
    # reduction axis), so o_ref stays resident in VMEM across all k steps:
    # accumulate directly into it (f32 output), no scratch + writeback pass.
    @pl.when(pl.program_id(2) == 0)
    def _():
        o_ref[...] = jnp.zeros_like(o_ref)

    o_ref[...] += jnp.dot(
        x_ref[...], y_ref[...], preferred_element_type=jnp.float32
    )


def wrapper_module_forward(x, y, *, tm=512, tn=1024, tk=1024, use_bf16=False):
    """Pallas implementation of WrapperModule(torch.mm).forward(x, y)."""
    M, K = x.shape
    K2, N = y.shape
    assert K == K2, "inner dimensions must match"

    # bf16-operand / f32-accumulate MXU fast path: auto when inputs are
    # already bf16, opt-in for f32 inputs (changes numerics vs exact f32 mm).
    if x.dtype == jnp.bfloat16 and y.dtype == jnp.bfloat16:
        use_bf16 = True
    if use_bf16:
        x = x.astype(jnp.bfloat16)
        y = y.astype(jnp.bfloat16)
    m_align = 16 if use_bf16 else 8  # bf16 packs two rows per sublane

    # Bias the output tile toward the long output dim for very rectangular
    # problems (cuts HBM re-reads of the large operand).
    if M >= 2 * N and tm < tn:
        tm, tn = tn, tm

    # --- tile adaptation --------------------------------------------------
    # M / N: full-dim blocks for small problems (always a legal block shape),
    # otherwise aligned tiles; Pallas boundary blocks absorb the remainder
    # (garbage in the M/N overhang never reaches valid output and
    # out-of-bounds writes are masked), so no M/N padding pass is needed.
    tm = M if M <= tm else _round_up(tm, m_align)
    tn = N if N <= tn else _round_up(tn, 128)

    # K: single full-width step if it fits, otherwise 128-aligned chunks.
    # Only the K overhang must be zero-padded (garbage there would corrupt
    # valid output rows/cols of the reduction).
    if K <= tk:
        tk, Kp = K, K
    else:
        n_k = _cdiv(K, tk)
        tk = _round_up(_cdiv(K, n_k), 128)
        Kp = n_k * tk

    grid_i, grid_j, grid_k = _cdiv(M, tm), _cdiv(N, tn), Kp // tk

    # v7x has 2 TensorCores that only get work if a "parallel" grid axis has
    # >= 2 iterations; split one output tile if both parallel axes collapsed.
    if grid_i == 1 and grid_j == 1:
        if N > 128:
            tn = max(128, _round_up(_cdiv(N, 2), 128))
            grid_j = _cdiv(N, tn)
        elif M > m_align:
            tm = max(m_align, _round_up(_cdiv(M, 2), m_align))
            grid_i = _cdiv(M, tm)

    if Kp != K:
        x = jnp.pad(x, ((0, 0), (0, Kp - K)))
        y = jnp.pad(y, ((0, Kp - K), (0, 0)))

    itemsize = 2 if use_bf16 else 4
    out = pl.pallas_call(
        _mm_kernel,
        out_shape=jax.ShapeDtypeStruct((M, N), jnp.float32),
        grid_spec=pltpu.PrefetchScalarGridSpec(
            num_scalar_prefetch=0,
            grid=(grid_i, grid_j, grid_k),
            in_specs=[
                pl.BlockSpec((tm, tk), lambda i, j, k: (i, k)),
                # TODO(synk): pipeline_mode=pl.Buffered(3) here would help hide
                # exposed y-operand DMA on v5e's slower HBM (needs per-chip gate).
                pl.BlockSpec((tk, tn), lambda i, j, k: (k, j)),
            ],
            out_specs=pl.BlockSpec((tm, tn), lambda i, j, k: (i, j)),
        ),
        compiler_params=pltpu.CompilerParams(
            # i/j parallel -> megacore / v7x 2-TC sharding; k is the reduction.
            dimension_semantics=("parallel", "parallel", "arbitrary"),
            vmem_limit_bytes=_pick_vmem_limit(),
        ),
        cost_estimate=pl.CostEstimate(
            flops=2 * M * N * Kp,
            transcendentals=0,
            # inputs are re-read once per output block along the other axis
            bytes_accessed=itemsize * (M * Kp * grid_j + Kp * N * grid_i)
            + 4 * M * N,
        ),
    )(x, y)
    return out


if __name__ == "__main__":
    key = jax.random.PRNGKey(0)
    kx, ky = jax.random.split(key)

    # Small, deliberately non-tile-aligned shapes for the wrapped torch.mm.
    M, K, N = 96, 200, 160
    x = jax.random.normal(kx, (M, K), dtype=jnp.float32)
    y = jax.random.normal(ky, (K, N), dtype=jnp.float32)
    ref = jnp.dot(x, y)

    # Default (large-tile) path: single k-step, boundary blocks on N.
    out = jax.block_until_ready(wrapper_module_forward(x, y))
    assert out.shape == ref.shape, "shape mismatch vs reference"
    assert jnp.allclose(out, ref, atol=1e-4, rtol=1e-4), "default path mismatch"

    # Small-tile path: multi-step k reduction (zero-padded K) plus boundary
    # blocks on both M and N; exercises the resident-accumulator init/add path.
    out2 = jax.block_until_ready(
        wrapper_module_forward(x, y, tm=64, tn=128, tk=128)
    )
    assert jnp.allclose(out2, ref, atol=1e-4, rtol=1e-4), "tiled path mismatch"

    print("KERNEL_OK")
</pallas_src>

<mosaic_0001>
module attributes {stable_mosaic.version = 11 : i64} {
  func.func @_mm_kernel(%arg0: i32, %arg1: i32, %arg2: i32, %arg3: memref<96x200xf32, #tpu.memory_space<vmem>>, %arg4: memref<200x128xf32, #tpu.memory_space<vmem>>, %arg5: memref<96x128xf32, #tpu.memory_space<vmem>>) attributes {dimension_semantics = [#tpu.dimension_semantics<parallel>, #tpu.dimension_semantics<parallel>, #tpu.dimension_semantics<arbitrary>], iteration_bounds = array<i64: 1, 2, 1>, scalar_prefetch = 0 : i64, scratch_operands = 0 : i64, tpu.core_type = #tpu.core_type<tc>, window_params = [{transform_indices = @transform_0, window_bounds = array<i64: 96, 200>}, {transform_indices = @transform_1, window_bounds = array<i64: 200, 128>}, {transform_indices = @transform_2, window_bounds = array<i64: 96, 128>}]} {
    %c0_i32 = arith.constant 0 : i32
    %0 = arith.cmpi eq, %arg2, %c0_i32 : i32
    %1 = arith.extui %0 : i1 to i32
    %c0_i32_0 = arith.constant 0 : i32
    %2 = arith.cmpi ne, %1, %c0_i32_0 : i32
    scf.if %2 {
      %cst_8 = arith.constant 0.000000e+00 : f32
      %9 = vector.broadcast %cst_8 : f32 to vector<96x128xf32>
      %c0_9 = arith.constant 0 : index
      %c0_10 = arith.constant 0 : index
      %10 = vector.load %arg5[%c0_9, %c0_10] : memref<96x128xf32, #tpu.memory_space<vmem>>, vector<96x128xf32>
      tpu.vector_store %arg5[%c0_9, %c0_10], %9 {strides = array<i32>} : memref<96x128xf32, #tpu.memory_space<vmem>>, vector<96x128xf32>,
    } else {
    }
    %c0 = arith.constant 0 : index
    %c0_1 = arith.constant 0 : index
    %3 = vector.load %arg5[%c0, %c0_1] : memref<96x128xf32, #tpu.memory_space<vmem>>, vector<96x128xf32>
    %c0_2 = arith.constant 0 : index
    %c0_3 = arith.constant 0 : index
    %4 = vector.load %arg3[%c0_2, %c0_3] : memref<96x200xf32, #tpu.memory_space<vmem>>, vector<96x200xf32>
    %c0_4 = arith.constant 0 : index
    %c0_5 = arith.constant 0 : index
    %5 = vector.load %arg4[%c0_4, %c0_5] : memref<200x128xf32, #tpu.memory_space<vmem>>, vector<200x128xf32>
    %cst = arith.constant dense<0.000000e+00> : vector<96x128xf32>
    %6 = tpu.matmul %4, %5, %cst {dimension_numbers = #tpu.dot_dimension_numbers<[1], [0], [0], [1], [0, 0, 1, 1], [], []>} : vector<96x200xf32>, vector<200x128xf32>, vector<96x128xf32> -> vector<96x128xf32>
    %7 = arith.addf %3, %6 : vector<96x128xf32>
    %c0_6 = arith.constant 0 : index
    %c0_7 = arith.constant 0 : index
    %8 = vector.load %arg5[%c0_6, %c0_7] : memref<96x128xf32, #tpu.memory_space<vmem>>, vector<96x128xf32>
    tpu.vector_store %arg5[%c0_6, %c0_7], %7 {strides = array<i32>} : memref<96x128xf32, #tpu.memory_space<vmem>>, vector<96x128xf32>,
    return
  }
  func.func @transform_0(%arg0: i32, %arg1: i32, %arg2: i32) -> (i32, i32) {
    %c0_i32 = arith.constant 0 : i32
    return %arg0, %arg2 : i32, i32
  }
  func.func @transform_1(%arg0: i32, %arg1: i32, %arg2: i32) -> (i32, i32) {
    %c0_i32 = arith.constant 0 : i32
    return %arg2, %arg1 : i32, i32
  }
  func.func @transform_2(%arg0: i32, %arg1: i32, %arg2: i32) -> (i32, i32) {
    %c0_i32 = arith.constant 0 : i32
    return %arg0, %arg1 : i32, i32
  }
}

</mosaic_0001>

<bundles_post_ra>
// kernel: tpu_custom_call.1
= control target key start
LH: loop header
LB: loop body
LE: loop exit
PB: predicated region body
PF: predicated region fallthrough
CT: control target
= control target key end

     0   :  { %s910_s9 = smov 0   ;;  %s912_s10 = smov 0   ;;  %s1177_s0 = inlined_call_operand.vmem [shape: f32[96,200], index: 0, kind: input, shape index: {}]   ;;  %s1178_s1 = inlined_call_operand.vmem [shape: f32[200,160], index: 1, kind: input, shape index: {}]   ;;  %s1179_s2 = inlined_call_operand.vmem [shape: f32[96,160], index: 2, kind: output, shape index: {}]  }
   0x1   :  { %s914_s11 = smov 0   ;;  %s916_s12 = smov 0  }
   0x2   :  { %s918_s13 = smov 0  }
   0x3 LB: > { %s27_s14 = sadd.s32 1, %s889_s12  ;;  %s764_s15 = sadd.s32 4294967295, %s893_s13   ;;  %s893_s13 = sphi %s918_s13, %s12_s13   ;;  %s889_s12 = sphi %s916_s12, %s1184_s12   ;;  %s885_s11 = sphi %s914_s11, %s1183_s11   ;;  %s881_s10 = sphi %s912_s10, %s1182_s10   ;;  %s877_s9 = sphi %s910_s9, %s1181_s9  }
   0x4   : > { %p29_p0 = scmp.ge.s32.totalorder %s27_s14, 2  ;;  %p75_p1 = scmp.ne.s32.totalorder %s881_s10, %s877_s9 }
   0x5   : > { %p76_p2 = scmp.eq.s32.totalorder %s893_s13, 0  ;;  %p107_p4 = scmp.eq.s32.totalorder %s764_s15, 1 }
   0x6   : > { %s1186_s14 = smov (%p29_p0, %s27_s14), 0  ;;  %s68_s17 = sadd.s32 1, %s881_s10 }
   0x7   : > { %p77_p3 = por %p76_p2, %p75_p1  ;;  %s64_s16 = ssub.s32 %s889_s12, %s1186_s14 }
   0x8   : > { %p66_p5 = scmp.eq.s32.totalorder %s64_s16, 0  ;;  %p945_p6 = por %p107_p4, %p75_p1 }
   0x9   : > { %p768_p7 = scmp.ge.s32.totalorder %s893_s13, 2 }
   0xa   : > { %s950_s19 = scalar_select %p66_p5, %s881_s10, %s68_s17  }
   0xb   : > { %144 = sbr.rel (%p768_p7) target bundleno = 45 (0x2d), region = 20 }
  0x10   : > { %147 = sbr.rel (!%p77_p3) target bundleno = 45 (0x2d), region = 24  ;;  %s149_s20 = sand.u32 (%p77_p3), 1, %s881_s10  }
  0x11   : > { %s769_s21 = sshll.u32 (%p77_p3), %s889_s12, 3  ;;  %s811_s22 = smul.u32 (%p77_p3), 200, %s149_s20 }
  0x12   : > { %s958_s25 = scalar_lea.vmem (%p77_p3), %s1178_s1, %s769_s21 }
  0x13   : > { %v233_v0 = vld [vmem:[%s958_s25] sm:$0xff] (%p77_p3)  ;;  %v235_v1 = vld [vmem:[%s958_s25 + $0x10] sm:$0xff] (%p77_p3)  ;;  %s963_s26 = scalar_lea.vmem (%p77_p3), [#allocation2], %s811_s22 }
  0x14   : > { %v237_v2 = vld [vmem:[%s958_s25 + $0x20] sm:$0xff] (%p77_p3)  ;;  %234 = vst [vmem:[%s963_s26] sm:$0xff] (%p77_p3), %v233_v0  ;;  %v239_v3 = vld [vmem:[%s958_s25 + $0x30] sm:$0xff] (%p77_p3) }
  0x15   : > { %236 = vst [vmem:[%s963_s26 + $0x8] sm:$0xff] %v235_v1  ;;  %v241_v4 = vld [vmem:[%s958_s25 + $0x40] sm:$0xff]  ;;  %v243_v5 = vld [vmem:[%s958_s25 + $0x50] sm:$0xff] }
  0x16   : > { %238 = vst [vmem:[%s963_s26 + $0x10] sm:$0xff] %v237_v2  ;;  %v245_v6 = vld [vmem:[%s958_s25 + $0x60] sm:$0xff]  ;;  %v247_v7 = vld [vmem:[%s958_s25 + $0x70] sm:$0xff] }
  0x17   : > { %240 = vst [vmem:[%s963_s26 + $0x18] sm:$0xff] %v239_v3  ;;  %v249_v8 = vld [vmem:[%s958_s25 + $0x80] sm:$0xff]  ;;  %v251_v9 = vld [vmem:[%s958_s25 + $0x90] sm:$0xff] }
  0x18   : > { %242 = vst [vmem:[%s963_s26 + $0x20] sm:$0xff] %v241_v4  ;;  %v253_v10 = vld [vmem:[%s958_s25 + $0xa0] sm:$0xff]  ;;  %v255_v11 = vld [vmem:[%s958_s25 + $0xb0] sm:$0xff] }
  0x19   : > { %244 = vst [vmem:[%s963_s26 + $0x28] sm:$0xff] %v243_v5  ;;  %v257_v12 = vld [vmem:[%s958_s25 + $0xc0] sm:$0xff]  ;;  %v259_v13 = vld [vmem:[%s958_s25 + $0xd0] sm:$0xff] }
  0x1a   : > { %246 = vst [vmem:[%s963_s26 + $0x30] sm:$0xff] %v245_v6  ;;  %v261_v14 = vld [vmem:[%s958_s25 + $0xe0] sm:$0xff]  ;;  %v263_v15 = vld [vmem:[%s958_s25 + $0xf0] sm:$0xff] }
  0x1b   : > { %248 = vst [vmem:[%s963_s26 + $0x38] sm:$0xff] %v247_v7  ;;  %v265_v16 = vld [vmem:[%s958_s25 + $0x100] sm:$0xff]  ;;  %v267_v17 = vld [vmem:[%s958_s25 + $0x110] sm:$0xff] }
  0x1c   : > { %250 = vst [vmem:[%s963_s26 + $0x40] sm:$0xff] %v249_v8  ;;  %v269_v18 = vld [vmem:[%s958_s25 + $0x120] sm:$0xff]  ;;  %v271_v19 = vld [vmem:[%s958_s25 + $0x130] sm:$0xff] }
  0x1d   : > { %252 = vst [vmem:[%s963_s26 + $0x48] sm:$0xff] %v251_v9  ;;  %v273_v20 = vld [vmem:[%s958_s25 + $0x140] sm:$0xff]  ;;  %v275_v21 = vld [vmem:[%s958_s25 + $0x150] sm:$0xff] }
  0x1e   : > { %254 = vst [vmem:[%s963_s26 + $0x50] sm:$0xff] %v253_v10  ;;  %v277_v22 = vld [vmem:[%s958_s25 + $0x160] sm:$0xff]  ;;  %v279_v23 = vld [vmem:[%s958_s25 + $0x170] sm:$0xff] }
  0x1f   : > { %256 = vst [vmem:[%s963_s26 + $0x58] sm:$0xff] %v255_v11  ;;  %v281_v24 = vld [vmem:[%s958_s25 + $0x180] sm:$0xff] }
  0x20   : > { %258 = vst [vmem:[%s963_s26 + $0x60] sm:$0xff] %v257_v12 }
  0x21   : > { %260 = vst [vmem:[%s963_s26 + $0x68] sm:$0xff] %v259_v13 }
  0x22   : > { %262 = vst [vmem:[%s963_s26 + $0x70] sm:$0xff] %v261_v14 }
  0x23   : > { %264 = vst [vmem:[%s963_s26 + $0x78] sm:$0xff] %v263_v15 }
  0x24   : > { %266 = vst [vmem:[%s963_s26 + $0x80] sm:$0xff] %v265_v16 }
  0x25   : > { %268 = vst [vmem:[%s963_s26 + $0x88] sm:$0xff] %v267_v17 }
  0x26   : > { %270 = vst [vmem:[%s963_s26 + $0x90] sm:$0xff] %v269_v18 }
  0x27   : > { %272 = vst [vmem:[%s963_s26 + $0x98] sm:$0xff] %v271_v19 }
  0x28   : > { %274 = vst [vmem:[%s963_s26 + $0xa0] sm:$0xff] %v273_v20 }
  0x29   : > { %276 = vst [vmem:[%s963_s26 + $0xa8] sm:$0xff] %v275_v21 }
  0x2a   : > { %278 = vst [vmem:[%s963_s26 + $0xb0] sm:$0xff] %v277_v22 }
  0x2b   : > { %280 = vst [vmem:[%s963_s26 + $0xb8] sm:$0xff] %v279_v23 }
  0x2c   : > { %282 = vst [vmem:[%s963_s26 + $0xc0] sm:$0xff] %v281_v24 }
  0x2d PF: > { %p770_p8 = scmp.ge.s32.totalorder %s893_s13, 1  ;;  %p287_p9 = scmp.lt.s32.totalorder %s893_s13, 3 }
  0x2f   : > { %p288_p10 = pnand %p770_p8, %p287_p9 }
  0x30   : > { %s294_s27 = sand.u32 (!%p288_p10), 1, %s877_s9  }
  0x31   : > { %291 = sbr.rel (%p288_p10) target bundleno = 277 (0x115), region = 62 }
  0x32   : > { %s812_s28 = smul.u32 (!%p288_p10), 200, %s294_s27 }
  0x33   : > { %s813_s20 = smul.u32 (!%p288_p10), 96, %s294_s27 }
  0x34   : > { %s1017_s29 = scalar_lea.vmem (!%p288_p10), [#allocation2], %s812_s28 }
  0x35   : > { %s1130_s21 = scalar_lea.vmem (!%p288_p10), [#allocation3], %s813_s20 }
  0x36   : > { %v405_v25 = vld [vmem:[%s1017_s29 + $0x78] sm:$0xff]  ;;  %v414_v26 = vld [vmem:[%s1017_s29 + $0xc0] sm:$0xff]  ;;  %v404_v27 = vld [vmem:[%s1017_s29 + $0x70] sm:$0xff]  ;;  %vm415_vm0 = vcmask 588800   ;;  %s783_s9 = sshll.u32 (%p945_p6), %s885_s11, 3 }
  0x37   : > { %786 = vmatpush.msra.mxu2 %v405_v25  ;;  %512 = vmatpush.msra.mxu1 %v414_v26  ;;  %v413_v28 = vld [vmem:[%s1017_s29 + $0xb8] sm:$0xff]  ;;  %v403_v29 = vld [vmem:[%s1017_s29 + $0x68] sm:$0xff]  ;;  %v412_v30 = vld [vmem:[%s1017_s29 + $0xb0] sm:$0xff]  ;;  %s593_s23 = scalar_lea.vmem (%p945_p6), %s1179_s2, %s783_s9 }
  0x38   : > { %452 = vmatpush.msra.mxu0 %v405_v25  ;;  %802 = vmatpush.msra.mxu3 %v414_v26  ;;  %v402_v31 = vld [vmem:[%s1017_s29 + $0x60] sm:$0xff]  ;;  %v411_v32 = vld [vmem:[%s1017_s29 + $0xa8] sm:$0xff]  ;;  %v401_v33 = vld [vmem:[%s1017_s29 + $0x58] sm:$0xff] }
  0x39   : > { %787 = vmatpush.msra.mxu2 %v404_v27  ;;  %513 = vmatpush.msra.mxu1 %v413_v28  ;;  %v410_v34 = vld [vmem:[%s1017_s29 + $0xa0] sm:$0xff]  ;;  %v400_v35 = vld [vmem:[%s1017_s29 + $0x50] sm:$0xff]  ;;  %v409_v36 = vld [vmem:[%s1017_s29 + $0x98] sm:$0xff] }
  0x3a   : > { %453 = vmatpush.msra.mxu0 %v404_v27  ;;  %803 = vmatpush.msra.mxu3 %v413_v28  ;;  %v399_v37 = vld [vmem:[%s1017_s29 + $0x48] sm:$0xff]  ;;  %v408_v38 = vld [vmem:[%s1017_s29 + $0x90] sm:$0xff]  ;;  %v398_v39 = vld [vmem:[%s1017_s29 + $0x40] sm:$0xff] }
  0x3b   : > { %788 = vmatpush.msra.mxu2 %v403_v29  ;;  %514 = vmatpush.msra.mxu1 %v412_v30  ;;  %v407_v40 = vld [vmem:[%s1017_s29 + $0x88] sm:$0xff]  ;;  %v397_v41 = vld [vmem:[%s1017_s29 + $0x38] sm:$0xff]  ;;  %v406_v42 = vld [vmem:[%s1017_s29 + $0x80] sm:$0xff] }
  0x3c   : > { %454 = vmatpush.msra.mxu0 %v403_v29  ;;  %804 = vmatpush.msra.mxu3 %v412_v30  ;;  %v367_v43 = vld [vmem:[%s1177_s0 + $0x8] sm:$0xff]  ;;  %v396_v44 = vld [vmem:[%s1017_s29 + $0x30] sm:$0xff]  ;;  %v393_v48 = vld [vmem:[%s1017_s29 + $0x18] sm:$0xff] }
  0x3d   : > { %789 = vmatpush.msra.mxu2 %v402_v31  ;;  %515 = vmatpush.msra.mxu1 %v411_v32  ;;  %v381_v45 = vld [vmem:[%s1177_s0 + $0x78] sm:$0xff]  ;;  %v395_v46 = vld [vmem:[%s1017_s29 + $0x28] sm:$0xff]  ;;  %v394_v47 = vld [vmem:[%s1017_s29 + $0x20] sm:$0xff] }
  0x3e   : > { %455 = vmatpush.msra.mxu0 %v402_v31  ;;  %805 = vmatpush.msra.mxu3 %v411_v32  ;;  %v369_v49 = vld [vmem:[%s1177_s0 + $0x18] sm:$0xff]  ;;  %v383_v51 = vld [vmem:[%s1177_s0 + $0x88] sm:$0xff]  ;;  %v376_v54 = vld [vmem:[%s1177_s0 + $0x50] sm:$0xff] }
  0x3f   : > { %790 = vmatpush.msra.mxu2 %v401_v33  ;;  %516 = vmatpush.msra.mxu1 %v410_v34  ;;  %v392_v50 = vld [vmem:[%s1017_s29 + $0x10] sm:$0xff]  ;;  %v391_v52 = vld [vmem:[%s1017_s29 + $0x8] sm:$0xff]  ;;  %v390_v53 = vld [vmem:[%s1017_s29] sm:$0xff] }
  0x40   : > { %456 = vmatpush.msra.mxu0 %v401_v33  ;;  %806 = vmatpush.msra.mxu3 %v410_v34  ;;  %v366_v55 = vld [vmem:[%s1177_s0] sm:$0xff]  ;;  %v371_v56 = vld [vmem:[%s1177_s0 + $0x28] sm:$0xff]  ;;  %v385_v57 = vld [vmem:[%s1177_s0 + $0x98] sm:$0xff] }
  0x41   : > { %791 = vmatpush.msra.mxu2 %v400_v35  ;;  %517 = vmatpush.msra.mxu1 %v409_v36  ;;  %v378_v58 = vld [vmem:[%s1177_s0 + $0x60] sm:$0xff]  ;;  %v368_v59 = vld [vmem:[%s1177_s0 + $0x10] sm:$0xff]  ;;  %v373_v60 = vld [vmem:[%s1177_s0 + $0x38] sm:$0xff] }
  0x42   : > { %457 = vmatpush.msra.mxu0 %v400_v35  ;;  %807 = vmatpush.msra.mxu3 %v409_v36  ;;  %v387_v61 = vld [vmem:[%s1177_s0 + $0xa8] sm:$0xff]  ;;  %v380_v62 = vld [vmem:[%s1177_s0 + $0x70] sm:$0xff]  ;;  %v370_v63 = vld [vmem:[%s1177_s0 + $0x20] sm:$0xff] }
  0x43   : > { %792 = vmatpush.msra.mxu2 %v399_v37  ;;  %518 = vmatpush.msra.mxu1 %v408_v38  ;;  %v375_v0 = vld [vmem:[%s1177_s0 + $0x48] sm:$0xff]  ;;  %v389_v1 = vld [vmem:[%s1177_s0 + $0xb8] sm:$0xff]  ;;  %v382_v2 = vld [vmem:[%s1177_s0 + $0x80] sm:$0xff] }
  0x44   : > { %458 = vmatpush.msra.mxu0 %v399_v37  ;;  %808 = vmatpush.msra.mxu3 %v408_v38  ;;  %v372_v3 = vld [vmem:[%s1177_s0 + $0x30] sm:$0xff]  ;;  %v377_v4 = vld [vmem:[%s1177_s0 + $0x58] sm:$0xff]  ;;  %v374_v6 = vld [vmem:[%s1177_s0 + $0x40] sm:$0xff] }
  0x45   : > { %793 = vmatpush.msra.mxu2 %v398_v39  ;;  %519 = vmatpush.msra.mxu1 %v407_v40  ;;  %v384_v5 = vld [vmem:[%s1177_s0 + $0x90] sm:$0xff]  ;;  %v379_v7 = vld [vmem:[%s1177_s0 + $0x68] sm:$0xff]  ;;  %v386_v8 = vld [vmem:[%s1177_s0 + $0xa0] sm:$0xff] }
  0x46   : > { %459 = vmatpush.msra.mxu0 %v398_v39  ;;  %809 = vmatpush.msra.mxu3 %v407_v40  ;;  %v388_v9 = vld [vmem:[%s1177_s0 + $0xb0] sm:$0xff] }
  0x47   : > { %794 = vmatpush.msra.mxu2 %v397_v41  ;;  %520 = vmatpush.msra.mxu1 %v406_v42 }
  0x48   : > { %771 = vmatmul.msk.f32.vlgmr.msra.gmra.mxu1 %vm415_vm0, %v367_v43  ;;  %460 = vmatpush.msra.mxu0 %v397_v41 }
  0x49   : > { %795 = vmatpush.msra.mxu2 %v396_v44  ;;  %810 = vmatpush.msra.mxu3 %v406_v42 }
  0x4a   : > { %461 = vmatpush.msra.mxu0 %v396_v44  ;;  %778 = vmatmul.msk.f32.vlgmr.msra.gmra.mxu3 %vm415_vm0, %v381_v45 }
  0x4b   : > { %796 = vmatpush.msra.mxu2 %v395_v46 }
  0x4c   : > { %462 = vmatpush.msra.mxu0 %v395_v46 }
  0x4d   : > { %797 = vmatpush.msra.mxu2 %v394_v47 }
  0x4e   : > { %463 = vmatpush.msra.mxu0 %v394_v47 }
  0x4f   : > { %798 = vmatpush.msra.mxu2 %v393_v48 }
  0x50   : > { %772 = vmatmul.msk.f32.gmra.mxu1 %vm415_vm0, %v369_v49  ;;  %464 = vmatpush.msra.mxu0 %v393_v48 }
  0x51   : > { %799 = vmatpush.msra.mxu2 %v392_v50 }
  0x52   : > { %465 = vmatpush.msra.mxu0 %v392_v50  ;;  %779 = vmatmul.msk.f32.gmra.mxu3 %vm415_vm0, %v383_v51 }
  0x53   : > { %800 = vmatpush.msra.mxu2 %v391_v52 }
  0x54   : > { %466 = vmatpush.msra.mxu0 %v391_v52 }
  0x55   : > { %801 = vmatpush.msra.mxu2 %v390_v53 }
  0x56   : > { %483 = vmatmul.f32.vlgmr.msra.gmra.mxu2 %v376_v54  ;;  %467 = vmatpush.msra.mxu0 %v390_v53 }
  0x57   : > { %468 = vmatmul.f32.vlgmr.msra.gmra.mxu0 %v366_v55 }
  0x58   : > { %773 = vmatmul.msk.f32.gmra.mxu1 %vm415_vm0, %v371_v56 }
  0x5a   : > { %780 = vmatmul.msk.f32.gmra.mxu3 %vm415_vm0, %v385_v57 }
  0x5e   : > { %486 = vmatmul.f32.gmra.mxu2 %v378_v58 }
  0x5f   : > { %471 = vmatmul.f32.gmra.mxu0 %v368_v59 }
  0x60   : > { %774 = vmatmul.msk.f32.gmra.mxu1 %vm415_vm0, %v373_v60 }
  0x62   : > { %781 = vmatmul.msk.f32.gmra.mxu3 %vm415_vm0, %v387_v61 }
  0x66   : > { %489 = vmatmul.f32.gmra.mxu2 %v380_v62 }
  0x67   : > { %474 = vmatmul.f32.gmra.mxu0 %v370_v63 }
  0x68   : > { %775 = vmatmul.msk.f32.gmra.mxu1 %vm415_vm0, %v375_v0 }
  0x6a   : > { %782 = vmatmul.msk.f32.gmra.mxu3 %vm415_vm0, %v389_v1 }
  0x6e   : > { %492 = vmatmul.f32.gmra.mxu2 %v382_v2 }
  0x6f   : > { %477 = vmatmul.f32.gmra.mxu0 %v372_v3 }
  0x70   : > { %776 = vmatmul.msk.f32.gmra.mxu1 %vm415_vm0, %v377_v4 }
  0x76   : > { %495 = vmatmul.f32.gmra.mxu2 %v384_v5 }
  0x77   : > { %480 = vmatmul.f32.gmra.mxu0 %v374_v6 }
  0x78   : > { %777 = vmatmul.msk.f32.gmra.mxu1 %vm415_vm0, %v379_v7 }
  0x7e   : > { %498 = vmatmul.f32.gmra.mxu2 %v386_v8 }
  0x86   : > { %501 = vmatmul.f32.gmra.mxu2 %v388_v9 }
  0xc5   : > { %v522_v10 = vpop.f32.mrf.mxu1 }
  0xcd   : > { %v525_v11 = vpop.f32.mrf.mxu1  ;;  %v543_v19 = vpop.f32.mrf.mxu3 }
  0xd4   : > { %v469_v12 = vpop.f32.mrf.mxu0 }
  0xd5   : > { %v528_v13 = vpop.f32.mrf.mxu1  ;;  %v523_v14 = vadd.f32 %v522_v10, %v469_v12  ;;  %v546_v25 = vpop.f32.mrf.mxu3 }
  0xd7   : > { %570 = vst [vmem:[%s1130_s21] sm:$0xff] %v523_v14 }
  0xd9   : > { %v484_v15 = vpop.f32.mrf.mxu2 }
  0xdc   : > { %v472_v16 = vpop.f32.mrf.mxu0 }
  0xdd   : > { %v531_v17 = vpop.f32.mrf.mxu1  ;;  %v526_v18 = vadd.f32 %v525_v11, %v472_v16  ;;  %v549_v33 = vpop.f32.mrf.mxu3 }
  0xde   : > { %v644_v46 = vld [vmem:[%s1130_s21] sm:$0xff] (%p945_p6) }
  0xdf   : > { %571 = vst [vmem:[%s1130_s21 + $0x8] sm:$0xff] %v526_v18 }
  0xe0   : > { %645 = vst [vmem:[%s593_s23] sm:$0xff] (%p945_p6), %v644_v46 }
  0xe1   : > { %v487_v20 = vpop.f32.mrf.mxu2 }
  0xe4   : > { %v475_v21 = vpop.f32.mrf.mxu0 }
  0xe5   : > { %v534_v22 = vpop.f32.mrf.mxu1  ;;  %v529_v23 = vadd.f32 %v528_v13, %v475_v21  ;;  %v552_v40 = vpop.f32.mrf.mxu3 }
  0xe6   : > { %v646_v47 = vld [vmem:[%s1130_s21 + $0x8] sm:$0xff] (%p945_p6) }
  0xe7   : > { %572 = vst [vmem:[%s1130_s21 + $0x10] sm:$0xff] %v529_v23 }
  0xe8   : > { %647 = vst [vmem:[%s593_s23 + $0x10] sm:$0xff] (%p945_p6), %v646_v47 }
  0xe9   : > { %v490_v24 = vpop.f32.mrf.mxu2 }
  0xea   : > { %v544_v26 = vadd.f32 %v543_v19, %v490_v24 }
  0xec   : > { %v478_v27 = vpop.f32.mrf.mxu0  ;;  %577 = vst [vmem:[%s1130_s21 + $0x38] sm:$0xff] %v544_v26 }
  0xed   : > { %v537_v28 = vpop.f32.mrf.mxu1  ;;  %v532_v29 = vadd.f32 %v531_v17, %v478_v27  ;;  %v555_v43 = vpop.f32.mrf.mxu3 }
  0xee   : > { %v538_v30 = vadd.f32 %v537_v28, %v484_v15  ;;  %v648_v48 = vld [vmem:[%s1130_s21 + $0x10] sm:$0xff] (%p945_p6) }
  0xef   : > { %573 = vst [vmem:[%s1130_s21 + $0x18] sm:$0xff] %v532_v29 }
  0xf0   : > { %575 = vst [vmem:[%s1130_s21 + $0x28] sm:$0xff] %v538_v30 }
  0xf1   : > { %v493_v31 = vpop.f32.mrf.mxu2  ;;  %649 = vst [vmem:[%s593_s23 + $0x20] sm:$0xff] (%p945_p6), %v648_v48 }
  0xf2   : > { %v547_v32 = vadd.f32 %v546_v25, %v493_v31 }
  0xf3   : > { %v658_v53 = vld [vmem:[%s1130_s21 + $0x38] sm:$0xff] (%p945_p6) }
  0xf4   : > { %v481_v34 = vpop.f32.mrf.mxu0  ;;  %578 = vst [vmem:[%s1130_s21 + $0x40] sm:$0xff] %v547_v32 }
  0xf5   : > { %v540_v35 = vpop.f32.mrf.mxu1  ;;  %v535_v36 = vadd.f32 %v534_v22, %v481_v34  ;;  %659 = vst [vmem:[%s593_s23 + $0x70] sm:$0xff] (%p945_p6), %v658_v53 }
  0xf6   : > { %v541_v37 = vadd.f32 %v540_v35, %v487_v20  ;;  %v650_v49 = vld [vmem:[%s1130_s21 + $0x18] sm:$0xff] (%p945_p6) }
  0xf7   : > { %574 = vst [vmem:[%s1130_s21 + $0x20] sm:$0xff] %v535_v36  ;;  %v654_v51 = vld [vmem:[%s1130_s21 + $0x28] sm:$0xff] (%p945_p6) }
  0xf8   : > { %576 = vst [vmem:[%s1130_s21 + $0x30] sm:$0xff] %v541_v37 }
  0xf9   : > { %v496_v38 = vpop.f32.mrf.mxu2  ;;  %651 = vst [vmem:[%s593_s23 + $0x30] sm:$0xff] (%p945_p6), %v650_v49 }
  0xfa   : > { %v550_v39 = vadd.f32 %v549_v33, %v496_v38  ;;  %655 = vst [vmem:[%s593_s23 + $0x50] sm:$0xff] (%p945_p6), %v654_v51 }
  0xfb   : > { %v660_v54 = vld [vmem:[%s1130_s21 + $0x40] sm:$0xff] (%p945_p6) }
  0xfc   : > { %579 = vst [vmem:[%s1130_s21 + $0x48] sm:$0xff] %v550_v39 }
  0xfd   : > { %661 = vst [vmem:[%s593_s23 + $0x80] sm:$0xff] (%p945_p6), %v660_v54 }
  0xfe   : > { %v652_v50 = vld [vmem:[%s1130_s21 + $0x20] sm:$0xff] (%p945_p6) }
  0xff   : > { %v656_v52 = vld [vmem:[%s1130_s21 + $0x30] sm:$0xff] (%p945_p6)  ;;  %653 = vst [vmem:[%s593_s23 + $0x40] sm:$0xff] (%p945_p6), %v652_v50 }
 0x100   : > { %657 = vst [vmem:[%s593_s23 + $0x60] sm:$0xff] (%p945_p6), %v656_v52 }
 0x101   : > { %v499_v41 = vpop.f32.mrf.mxu2 }
 0x102   : > { %v553_v42 = vadd.f32 %v552_v40, %v499_v41 }
 0x103   : > { %v662_v55 = vld [vmem:[%s1130_s21 + $0x48] sm:$0xff] (%p945_p6) }
 0x104   : > { %580 = vst [vmem:[%s1130_s21 + $0x50] sm:$0xff] %v553_v42 }
 0x105   : > { %663 = vst [vmem:[%s593_s23 + $0x90] sm:$0xff] (%p945_p6), %v662_v55 }
 0x108   : > { %588 = sbr.rel (!%p945_p6) target bundleno = 277 (0x115), region = 74 }
 0x109   : > { %v502_v44 = vpop.f32.mrf.mxu2 }
 0x10a   : > { %v556_v45 = vadd.f32 %v555_v43, %v502_v44 }
 0x10b   : > { %v664_v56 = vld [vmem:[%s1130_s21 + $0x50] sm:$0xff] (%p945_p6) }
 0x10c   : > { %581 = vst [vmem:[%s1130_s21 + $0x58] sm:$0xff] %v556_v45 }
 0x10d   : > { %665 = vst [vmem:[%s593_s23 + $0xa0] sm:$0xff] %v664_v56 }
 0x113   : > { %v666_v57 = vld [vmem:[%s1130_s21 + $0x58] sm:$0xff] }
 0x114   : > { %667 = vst [vmem:[%s593_s23 + $0xb0] sm:$0xff] %v666_v57 }
 0x115 PF: > { %s12_s13 = sadd.s32 1, %s893_s13   ;;  %s1181_s9 = smov %s881_s10 }
 0x116   : > { %p9_p11 = scmp.ge.s32.totalorder %s12_s13, 4   ;;  %s1182_s10 = smov %s950_s19 }
 0x117   : > { %s1183_s11 = smov %s889_s12  ;;  %s1184_s12 = smov %s1186_s14 }
 0x118   :  { %11 = sbr.rel (!%p9_p11) target bundleno = 3 (0x3), region = 146 }

</bundles_post_ra>
